<compile_context>
chip_gen: v7x
topology: tpu7x:2x2x1
jax: 0.10.0
libtpu: 0.0.40
codegen_flags: <defaults>
</compile_context>

<pallas_src>
import jax
import jax.numpy as jnp
import numpy as np
from jax.experimental import pallas as pl
from jax.experimental.pallas import tpu as pltpu


def fused_gcn_patch_kernel(x_ref, wpre_ref, bpre_ref, wpost_ref, cpost_ref, o_ref):
    """One row-block: x_ref (RB, F*N) -> o_ref (RB, Dp); two MXU matmuls, f32 accum."""
    h = jnp.dot(x_ref[...], wpre_ref[...], preferred_element_type=jnp.float32)
    h = jax.nn.gelu(h + bpre_ref[...])            # f32 bias add + EUP tanh gelu
    h = h.astype(wpost_ref.dtype)                 # bf16 operand -> native-rate MXU
    y = jnp.dot(h, wpost_ref[...], preferred_element_type=jnp.float32)
    o_ref[...] = (y + cpost_ref[...]).astype(o_ref.dtype)


def _round_up(v, m):
    return -(-v // m) * m


def gcn_patch_embed(x, adj_norm, w1, b1, w2, b2, wpt, patch_size, d_model,
                    rows_per_block=None,
                    compute_dtype=jnp.bfloat16,
                    out_dtype=jnp.bfloat16):
    """x: (B, steps, in_features) -> (B, steps//patch_size, d_model)."""
    B, steps, N = x.shape
    P = patch_size
    F = steps // P
    assert F * P == steps
    assert F == w1.shape[0], "GCNPatchEmbedding consistency requires steps == patch_size**2"
    H1 = w1.shape[1]                    # GCN hidden dim (4 * patch_size)
    NF = F * N
    NH1 = N * H1

    # ---------- host-side algebraic fold (f32) ----------
    wpt3 = wpt.reshape(N, F, d_model)                                        # node-major flatten(2,3)
    w_pre = jnp.einsum("nm,fk->fmnk", adj_norm, w1).reshape(NF, NH1)
    b_pre = jnp.broadcast_to(b1.reshape(1, H1), (N, H1)).reshape(1, NH1)     # f32
    w_post = jnp.einsum("nm,kf,nfd->mkd", adj_norm, w2, wpt3).reshape(NH1, d_model)
    c_post = jnp.einsum("f,nfd->d", b2.reshape(-1), wpt3).reshape(1, d_model)  # f32

    # pad d_model to a lane-dense multiple of 128 (protects non-128 configs)
    Dp = _round_up(d_model, 128)
    if Dp != d_model:
        w_post = jnp.pad(w_post, ((0, 0), (0, Dp - d_model)))
        c_post = jnp.pad(c_post, ((0, 0), (0, Dp - d_model)))

    # bf16 casts: halves x-read / weight footprint / output writeback; f32 MXU accum.
    w_pre = w_pre.astype(compute_dtype)
    w_post = w_post.astype(compute_dtype)
    b_pre = b_pre.astype(jnp.float32)
    c_post = c_post.astype(jnp.float32)

    # input rows: one graph per row, flattened (f, n) -- contiguous, no transpose
    R = B * P
    xflat = x.reshape(R, NF).astype(compute_dtype)

    # ---------- block-size policy (review item 1/2) ----------
    R8 = _round_up(R, 8)
    if rows_per_block is None:
        rows_per_block = max(8, (min(512, R8) // 8) * 8)
        # >= 2 blocks whenever there is enough work (two v7x TCs + pipelining)
        while rows_per_block > 8 and R8 >= 16 and pl.cdiv(R8, rows_per_block) < 2:
            rows_per_block = max(8, ((rows_per_block // 2) // 8) * 8)
        # prefer >= 6 blocks for deep pipelining as long as blocks stay >= 256 rows
        while rows_per_block > 256 and pl.cdiv(R8, rows_per_block) < 6:
            rows_per_block = max(256, ((rows_per_block // 2) // 8) * 8)
    else:
        rows_per_block = max(8, _round_up(rows_per_block, 8))
    num_blocks = pl.cdiv(R8, rows_per_block)
    Rpad = num_blocks * rows_per_block

    # zero-pad the tail so no block ever reads garbage rows (gelu(0) = 0, writes sliced off)
    if Rpad != R:
        xflat = jnp.pad(xflat, ((0, Rpad - R), (0, 0)))

    cost = pl.CostEstimate(
        flops=2 * Rpad * (NF * NH1 + NH1 * Dp),
        transcendentals=Rpad * NH1,
        bytes_accessed=(xflat.size * xflat.dtype.itemsize
                        + w_pre.size * w_pre.dtype.itemsize
                        + w_post.size * w_post.dtype.itemsize
                        + b_pre.size * b_pre.dtype.itemsize
                        + c_post.size * c_post.dtype.itemsize
                        + Rpad * Dp * jnp.dtype(out_dtype).itemsize),
    )

    out2 = pl.pallas_call(
        fused_gcn_patch_kernel,
        out_shape=jax.ShapeDtypeStruct((Rpad, Dp), out_dtype),
        grid_spec=pltpu.PrefetchScalarGridSpec(
            num_scalar_prefetch=0,
            grid=(num_blocks,),
            in_specs=[
                pl.BlockSpec((rows_per_block, NF), lambda i: (i, 0)),
                pl.BlockSpec(w_pre.shape, lambda i: (0, 0)),   # resident weights
                pl.BlockSpec(b_pre.shape, lambda i: (0, 0)),
                pl.BlockSpec(w_post.shape, lambda i: (0, 0)),
                pl.BlockSpec(c_post.shape, lambda i: (0, 0)),
            ],
            out_specs=pl.BlockSpec((rows_per_block, Dp), lambda i: (i, 0)),
        ),
        compiler_params=pltpu.CompilerParams(dimension_semantics=("parallel",)),
        cost_estimate=cost,
    )(xflat, w_pre, b_pre, w_post, c_post)

    return out2[:R, :d_model].reshape(B, P, d_model)


def reference(x, adj_norm, w1, b1, w2, b2, wpt, patch_size):
    """Plain-JAX (f32, unfused) mirror of GCNPatchEmbedding.patch with the assumed GCN."""
    B, steps, N = x.shape
    P = patch_size
    F = steps // P
    xg = jnp.transpose(x.reshape(B, P, F, N), (0, 1, 3, 2))          # (B, P, N, F)
    g = xg.reshape(B * P, N, F)
    ax = jnp.einsum("nm,gmf->gnf", adj_norm, g)
    h = jax.nn.gelu(jnp.einsum("gnf,fk->gnk", ax, w1) + b1)
    ah = jnp.einsum("nm,gmk->gnk", adj_norm, h)
    o = jnp.einsum("gnk,kf->gnf", ah, w2) + b2                       # (B*P, N, F)
    z = o.reshape(B, P, N * F)                                       # flatten(2,3), node-major
    return jnp.einsum("bpf,fd->bpd", z, wpt)                         # patcher (no bias)


if __name__ == "__main__":
    # small shapes consistent with the module: steps = patch_size**2
    batch = 2
    in_features = 4                    # graph nodes
    patch_size = 8
    steps = patch_size * patch_size    # 64
    d_model = 128                      # lane-dense output (multiple of 128)
    hidden = patch_size * 4            # GCN hidden dim

    key = jax.random.PRNGKey(0)
    k_adj, k_w1, k_b1, k_w2, k_b2, k_wp, k_x = jax.random.split(key, 7)

    # symmetric random adjacency, normalized: D^-1/2 (A + I) D^-1/2
    A = (jax.random.uniform(k_adj, (in_features, in_features)) > 0.5).astype(jnp.float32)
    A = jnp.maximum(A, A.T)
    A_hat = A + jnp.eye(in_features, dtype=jnp.float32)
    d_inv_sqrt = 1.0 / jnp.sqrt(A_hat.sum(-1))
    adj_norm = d_inv_sqrt[:, None] * A_hat * d_inv_sqrt[None, :]

    def linear_init(k, fan_in, shape):
        bound = 1.0 / np.sqrt(fan_in)
        return jax.random.uniform(k, shape, jnp.float32, -bound, bound)

    w1 = linear_init(k_w1, patch_size, (patch_size, hidden))          # GCN layer 1
    b1 = linear_init(k_b1, patch_size, (1, hidden))
    w2 = linear_init(k_w2, hidden, (hidden, patch_size))              # GCN layer 2
    b2 = linear_init(k_b2, hidden, (1, patch_size))
    # patcher: nn.Linear(patch_size * in_features, d_model, bias=False); stored as weight.T
    wpt = linear_init(k_wp, patch_size * in_features,
                      (in_features * patch_size, d_model))

    x = jax.random.normal(k_x, (batch, steps, in_features), jnp.float32)

    out = gcn_patch_embed(x, adj_norm, w1, b1, w2, b2, wpt, patch_size, d_model)
    out = jax.block_until_ready(out)

    ref = jax.block_until_ready(reference(x, adj_norm, w1, b1, w2, b2, wpt, patch_size))

    assert out.shape == (batch, steps // patch_size, d_model), out.shape
    # bf16 inputs/weights/output (f32 accumulation) -> loosened tolerance vs f32 reference
    if not np.allclose(np.asarray(out, dtype=np.float32), np.asarray(ref),
                       atol=2e-2, rtol=2e-2):
        raise AssertionError("Pallas kernel output mismatches plain-JAX reference")

    print("KERNEL_OK")
</pallas_src>

<mosaic_0001>
module attributes {stable_mosaic.version = 11 : i64} {
  func.func @fused_gcn_patch_kernel(%arg0: i32, %arg1: memref<8x32xbf16, #tpu.memory_space<vmem>>, %arg2: memref<32x128xbf16, #tpu.memory_space<vmem>>, %arg3: memref<1x128xf32, #tpu.memory_space<vmem>>, %arg4: memref<128x128xbf16, #tpu.memory_space<vmem>>, %arg5: memref<1x128xf32, #tpu.memory_space<vmem>>, %arg6: memref<8x128xbf16, #tpu.memory_space<vmem>>) attributes {dimension_semantics = [#tpu.dimension_semantics<parallel>], iteration_bounds = array<i64: 2>, scalar_prefetch = 0 : i64, scratch_operands = 0 : i64, tpu.core_type = #tpu.core_type<tc>, window_params = [{transform_indices = @transform_0, window_bounds = array<i64: 8, 32>}, {pipeline_mode = #tpu.pipeline_mode<synchronous>, transform_indices = @transform_1, window_bounds = array<i64: 32, 128>}, {pipeline_mode = #tpu.pipeline_mode<synchronous>, transform_indices = @transform_2, window_bounds = array<i64: 1, 128>}, {pipeline_mode = #tpu.pipeline_mode<synchronous>, transform_indices = @transform_3, window_bounds = array<i64: 128, 128>}, {pipeline_mode = #tpu.pipeline_mode<synchronous>, transform_indices = @transform_4, window_bounds = array<i64: 1, 128>}, {transform_indices = @transform_5, window_bounds = array<i64: 8, 128>}]} {
    %c0 = arith.constant 0 : index
    %c0_0 = arith.constant 0 : index
    %0 = vector.load %arg1[%c0, %c0_0] : memref<8x32xbf16, #tpu.memory_space<vmem>>, vector<8x32xbf16>
    %c0_1 = arith.constant 0 : index
    %c0_2 = arith.constant 0 : index
    %1 = vector.load %arg2[%c0_1, %c0_2] : memref<32x128xbf16, #tpu.memory_space<vmem>>, vector<32x128xbf16>
    %cst = arith.constant dense<0.000000e+00> : vector<8x128xf32>
    %2 = tpu.matmul %0, %1, %cst {dimension_numbers = #tpu.dot_dimension_numbers<[1], [0], [0], [1], [0, 0, 1, 1], [], []>} : vector<8x32xbf16>, vector<32x128xbf16>, vector<8x128xf32> -> vector<8x128xf32>
    %c0_3 = arith.constant 0 : index
    %c0_4 = arith.constant 0 : index
    %3 = vector.load %arg3[%c0_3, %c0_4] : memref<1x128xf32, #tpu.memory_space<vmem>>, vector<1x128xf32>
    %4 = vector.broadcast %3 : vector<1x128xf32> to vector<8x128xf32>
    %5 = arith.addf %2, %4 : vector<8x128xf32>
    %6 = arith.mulf %5, %5 : vector<8x128xf32>
    %7 = arith.mulf %5, %6 : vector<8x128xf32>
    %cst_5 = arith.constant 4.471500e-02 : f32
    %8 = vector.broadcast %cst_5 : f32 to vector<8x128xf32>
    %9 = arith.mulf %8, %7 : vector<8x128xf32>
    %10 = arith.addf %5, %9 : vector<8x128xf32>
    %cst_6 = arith.constant 0.797884583 : f32
    %11 = vector.broadcast %cst_6 : f32 to vector<8x128xf32>
    %12 = arith.mulf %11, %10 : vector<8x128xf32>
    %13 = math.tanh %12 : vector<8x128xf32>
    %cst_7 = arith.constant 1.000000e+00 : f32
    %14 = vector.broadcast %cst_7 : f32 to vector<8x128xf32>
    %15 = arith.addf %14, %13 : vector<8x128xf32>
    %cst_8 = arith.constant 5.000000e-01 : f32
    %16 = vector.broadcast %cst_8 : f32 to vector<8x128xf32>
    %17 = arith.mulf %16, %15 : vector<8x128xf32>
    %18 = arith.mulf %5, %17 : vector<8x128xf32>
    %19 = arith.truncf %18 : vector<8x128xf32> to vector<8x128xbf16>
    %c0_9 = arith.constant 0 : index
    %c0_10 = arith.constant 0 : index
    %20 = vector.load %arg4[%c0_9, %c0_10] : memref<128x128xbf16, #tpu.memory_space<vmem>>, vector<128x128xbf16>
    %cst_11 = arith.constant dense<0.000000e+00> : vector<8x128xf32>
    %21 = tpu.matmul %19, %20, %cst_11 {dimension_numbers = #tpu.dot_dimension_numbers<[1], [0], [0], [1], [0, 0, 1, 1], [], []>} : vector<8x128xbf16>, vector<128x128xbf16>, vector<8x128xf32> -> vector<8x128xf32>
    %c0_12 = arith.constant 0 : index
    %c0_13 = arith.constant 0 : index
    %22 = vector.load %arg5[%c0_12, %c0_13] : memref<1x128xf32, #tpu.memory_space<vmem>>, vector<1x128xf32>
    %23 = vector.broadcast %22 : vector<1x128xf32> to vector<8x128xf32>
    %24 = arith.addf %21, %23 : vector<8x128xf32>
    %25 = arith.truncf %24 : vector<8x128xf32> to vector<8x128xbf16>
    %c0_14 = arith.constant 0 : index
    %c0_15 = arith.constant 0 : index
    %26 = vector.load %arg6[%c0_14, %c0_15] : memref<8x128xbf16, #tpu.memory_space<vmem>>, vector<8x128xbf16>
    tpu.vector_store %arg6[%c0_14, %c0_15], %25 {strides = array<i32>} : memref<8x128xbf16, #tpu.memory_space<vmem>>, vector<8x128xbf16>,
    return
  }
  func.func @transform_0(%arg0: i32) -> (i32, i32) {
    %c0_i32 = arith.constant 0 : i32
    %c0_i32_0 = arith.constant 0 : i32
    return %arg0, %c0_i32 : i32, i32
  }
  func.func @transform_1(%arg0: i32) -> (i32, i32) {
    %c0_i32 = arith.constant 0 : i32
    %c0_i32_0 = arith.constant 0 : i32
    %c0_i32_1 = arith.constant 0 : i32
    return %c0_i32, %c0_i32_0 : i32, i32
  }
  func.func @transform_2(%arg0: i32) -> (i32, i32) {
    %c0_i32 = arith.constant 0 : i32
    %c0_i32_0 = arith.constant 0 : i32
    %c0_i32_1 = arith.constant 0 : i32
    return %c0_i32, %c0_i32_0 : i32, i32
  }
  func.func @transform_3(%arg0: i32) -> (i32, i32) {
    %c0_i32 = arith.constant 0 : i32
    %c0_i32_0 = arith.constant 0 : i32
    %c0_i32_1 = arith.constant 0 : i32
    return %c0_i32, %c0_i32_0 : i32, i32
  }
  func.func @transform_4(%arg0: i32) -> (i32, i32) {
    %c0_i32 = arith.constant 0 : i32
    %c0_i32_0 = arith.constant 0 : i32
    %c0_i32_1 = arith.constant 0 : i32
    return %c0_i32, %c0_i32_0 : i32, i32
  }
  func.func @transform_5(%arg0: i32) -> (i32, i32) {
    %c0_i32 = arith.constant 0 : i32
    %c0_i32_0 = arith.constant 0 : i32
    return %arg0, %c0_i32 : i32, i32
  }
}

</mosaic_0001>

<bundles_post_ra>
// kernel: tpu_custom_call.1
= control target key start
LH: loop header
LB: loop body
LE: loop exit
PB: predicated region body
PF: predicated region fallthrough
CT: control target
= control target key end

     0   :  { %10 = vsyncpa [#allocation3], 0  ;;  %s1151_s0 = inlined_call_operand.hbm [shape: bf16[16,32], index: 0, kind: input, shape index: {}]   ;;  %s1152_s1 = inlined_call_operand.hbm [shape: bf16[32,128], index: 1, kind: input, shape index: {}]   ;;  %s1153_s2 = inlined_call_operand.vmem [shape: f32[1,128], index: 2, kind: input, shape index: {}]   ;;  %s1154_s3 = inlined_call_operand.hbm [shape: bf16[128,128], index: 3, kind: input, shape index: {}]   ;;  %s1155_s4 = inlined_call_operand.vmem [shape: f32[1,128], index: 4, kind: input, shape index: {}]   ;;  %s1156_s5 = inlined_call_operand.hbm [shape: bf16[16,128], index: 5, kind: output, shape index: {}]  }
   0x1   :  { %12 = vsyncpa [#allocation3 + $0x1], 0 }
   0x2   :  { %13 = vsyncpa [#allocation6], 0 }
   0x3   :  { %14 = vsyncpa [#allocation4], 0 }
   0x4   :  { %16 = vsyncpa [#allocation4 + $0x1], 0  ;;  %s912_s18 = smov 0   ;;  %s914_s19 = smov 0  }
   0x5   :  { %s916_s20 = smov 0   ;;  %s918_s21 = smov 0  }
   0x6 LB: > { %s933_s22 = sadd.s32 4294967295, %s872_s21   ;;  %s564_s23 = sadd.s32 4294967294, %s872_s21   ;;  %s872_s21 = sphi %s918_s21, %s1176_s21   ;;  %s868_s20 = sphi %s916_s20, %s1175_s20   ;;  %s864_s19 = sphi %s914_s19, %s1174_s19   ;;  %s860_s18 = sphi %s912_s18, %s1173_s18  }
   0x7   : > { %p42_p0 = scmp.ne.s32.totalorder %s864_s19, %s860_s18  ;;  %p1157_p1 = scmp.eq.s32.totalorder %s933_s22, 0 }
   0x8   : > { %p156_p3 = scmp.eq.s32.totalorder %s564_s23, 1  ;;  %p565_p5 = scmp.ge.s32.totalorder %s872_s21, 1 }
   0x9   : > { %p942_p4 = por %p1157_p1, %p42_p0  ;;  %p163_p7 = scmp.lt.s32.totalorder %s872_s21, 3 }
   0xa   : > { %p947_p6 = por %p156_p3, %p42_p0  ;;  %s874_s27 = smov [#allocation5]  }
   0xb   : > { %s1160_s24 = scalar_select %p942_p4, 1, 0 }
   0xc   : > { %s1161_s25 = scalar_select %p947_p6, 1, 0 }
   0xd   : > { %p952_p8 = pnand %p565_p5, %p163_p7  ;;  %s175_s28 = sshll.u32 %s874_s27, 4  ;;  %s956_s28 = int_to_ptr.vmem [resolvable:$true] %s175_s28 }
   0xe   : > { %s875_s30 = smov [#allocation7]   ;;  %s716_s9 = scalar_lea.hbm %s1152_s1, 256 }
   0xf   : > { %p645_p9 = pneg %p952_p8  ;;  %s191_s6 = sshll.u32 %s875_s30, 4  ;;  %s967_s6 = int_to_ptr.vmem [resolvable:$true] %s191_s6 }
  0x10   : > { %p717_p12 = scmp.ne.s32.totalorder %s1152_s1, %s716_s9  ;;  %p723_p5 = scmp.lt.u32.totalorder %s716_s9, %s1152_s1 }
  0x11   : > { %p963_p11 = pnand %p645_p9, %p1157_p1 }
  0x13   : > { %p718_p13 = pneg %p963_p11 }
  0x15   : > { %p719_p0 = pnand %p718_p13, %p717_p12 }
  0x17   : > { %p720_p3 = pneg %p719_p0 }
  0x19   : > { %p725_p7 = pnand %p723_p5, %p720_p3 }
  0x1b   : > { %728 = shalt.err (!%p725_p7)
}
  0x1c   : > { %s729_s14 = scalar_lea.vmem %s956_s28, 256  ;;  %p737_p2 = scmp.lt.s32.totalorder %s956_s28, %s956_s28 }
  0x1d   : > { %p730_p9 = scmp.ne.s32.totalorder %s956_s28, %s729_s14  ;;  %p738_p12 = scmp.lt.s32.totalorder %s729_s14, %s729_s14 }
  0x1f   : > { %p732_p10 = pnand %p730_p9, %p718_p13  ;;  %p739_p0 = por %p738_p12, %p737_p2 }
  0x21   : > { %p733_p1 = pneg %p732_p10 }
  0x23   : > { %p740_p6 = pnand %p739_p0, %p733_p1 }
  0x25   : > { %743 = shalt.err (!%p740_p6)
}
  0x26   : > { %s876_s15 = smov 64   ;;  %s877_s16 = smov 4  }
  0x27   : > { %648 = dma.hbm_to_vmem [thread:$0]  (!%p963_p11), %s1152_s1, 256, %s956_s28, [#allocation6], %s876_s15, %s876_s15, %s877_s16  }
  0x28   : > { %s744_s7 = scalar_lea.hbm %s1154_s3, 1024 }
  0x29   : > { %p745_p2 = scmp.ne.s32.totalorder %s1154_s3, %s744_s7  ;;  %p751_p10 = scmp.lt.u32.totalorder %s744_s7, %s1154_s3 }
  0x2b   : > { %p747_p1 = pnand %p745_p2, %p718_p13 }
  0x2d   : > { %p748_p6 = pneg %p747_p1 }
  0x2f   : > { %p753_p3 = pnand %p751_p10, %p748_p6 }
  0x31   : > { %756 = shalt.err (!%p753_p3)
}
  0x32   : > { %s757_s28 = scalar_lea.vmem %s967_s6, 1024  ;;  %p765_p12 = scmp.lt.s32.totalorder %s967_s6, %s967_s6 }
  0x33   : > { %p758_p5 = scmp.ne.s32.totalorder %s967_s6, %s757_s28  ;;  %p766_p0 = scmp.lt.s32.totalorder %s757_s28, %s757_s28 }
  0x35   : > { %p760_p7 = pnand %p758_p5, %p718_p13  ;;  %p767_p2 = por %p766_p0, %p765_p12 }
  0x37   : > { %p761_p9 = pneg %p760_p7 }
  0x39   : > { %p768_p1 = pnand %p767_p2, %p761_p9 }
  0x3b   : > { %771 = shalt.err (!%p768_p1)
}
  0x3c   : > { %651 = dma.hbm_to_vmem [thread:$0]  (!%p963_p11), %s1154_s3, 1024, %s967_s6, [#allocation6], %s876_s15, %s876_s15, %s877_s16  }
  0x3d   : > { %s1022_s14 = sadd.s32 1, %s872_s21   ;;  %s29_s29 = sadd.s32 1, %s868_s20 }
  0x3e   : > { %s26_s17 = ssub.s32 %s872_s21, %s1022_s14  ;;  %p36_p13 = scmp.ne.s32.totalorder %s868_s20, %s864_s19 }
  0x3f   : > { %p27_p6 = scmp.eq.s32.totalorder %s26_s17, 0  ;;  %p37_p10 = scmp.eq.s32.totalorder %s872_s21, 0 }
  0x40   : > { %p1164_p3 = scmp.eq.s32.totalorder %s933_s22, 1  ;;  %p662_p7 = scmp.lt.s32.totalorder %s872_s21, 2 }
  0x41   : > { %s1038_s27 = scalar_select %p27_p6, %s868_s20, %s29_s29  }
  0x42   : > { %p1032_p5 = por %p1164_p3, %p36_p13  ;;  %p38_p9 = por %p37_p10, %p36_p13 }
  0x43   : > { %s208_s30 = sand.u32 1, %s868_s20   ;;  %s570_s6 = sshll.u32 %s872_s21, 6 }
  0x44   : > { %s1165_s23 = scalar_select %p1032_p5, 1, 0 }
  0x45   : > { %s569_s7 = sshll.u32 %s208_s30, 2  ;;  %s1045_s8 = scalar_lea.hbm %s1151_s0, %s570_s6 }
  0x46   : > { %s212_s9 = scalar_lea.vmem [#allocation2], %s569_s7  ;;  %p1049_p11 = pnand %p662_p7, %p38_p9 }
  0x47   : > { %s219_s10 = sshll.u32 %s212_s9, 4  ;;  %s209_s28 = scalar_lea.sflag [#allocation3], %s208_s30  ;;  %s1047_s10 = int_to_ptr.vmem [resolvable:$true] %s219_s10 }
  0x48   : > { %s772_s12 = scalar_lea.hbm %s1045_s8, 64  ;;  %p774_p0 = pneg %p1049_p11 }
  0x49   : > { %p773_p12 = scmp.ne.s32.totalorder %s1045_s8, %s772_s12  ;;  %s777_s17 = scalar_lea.hbm %s1151_s0, 128 }
  0x4a   : > { %p778_p13 = scmp.lt.u32.totalorder %s1045_s8, %s1151_s0  ;;  %p779_p6 = scmp.lt.u32.totalorder %s777_s17, %s772_s12 }
  0x4b   : > { %p775_p2 = pnand %p774_p0, %p773_p12  ;;  %p781_p3 = scmp.lt.u32.totalorder %s772_s12, %s1045_s8 }
  0x4c   : > { %p780_p10 = por %p779_p6, %p778_p13 }
  0x4d   : > { %p776_p1 = pneg %p775_p2 }
  0x4e   : > { %p782_p7 = por %p781_p3, %p780_p10 }
  0x50   : > { %p783_p9 = pnand %p782_p7, %p776_p1 }
  0x52   : > { %786 = shalt.err (!%p783_p9)
}
  0x53   : > { %s787_s30 = scalar_lea.vmem %s1047_s10, 64  ;;  %s878_s15 = smov [#allocation2]  }
  0x54   : > { %p788_p12 = scmp.ne.s32.totalorder %s1047_s10, %s787_s30  ;;  %s792_s16 = sshll.u32 %s878_s15, 4  ;;  %s793_s16 = int_to_ptr.vmem [resolvable:$false] %s792_s16 }
  0x55   : > { %s794_s9 = scalar_lea.vmem %s793_s16, 128  ;;  %p795_p4 = scmp.lt.s32.totalorder %s1047_s10, %s793_s16 }
  0x56   : > { %p790_p2 = pnand %p788_p12, %p774_p0  ;;  %p796_p13 = scmp.lt.s32.totalorder %s794_s9, %s787_s30 }
  0x58   : > { %p791_p5 = pneg %p790_p2  ;;  %p797_p6 = por %p796_p13, %p795_p4 }
  0x5a   : > { %p798_p10 = pnand %p797_p6, %p791_p5 }
  0x5c   : > { %801 = shalt.err (!%p798_p10)
}
  0x5d   : > { %655 = dma.hbm_to_vmem [thread:$0]  (!%p1049_p11), %s1045_s8, 64, %s1047_s10, %s209_s28  }
  0x5e   : > { %228 = sbr.rel (%p952_p8) target bundleno = 588 (0x24c), region = 40  ;;  %s1081_s12 = sand.u32 (!%p952_p8), 1, %s864_s19  }
  0x5f   : > { %s572_s13 = sshll.u32 (!%p952_p8), %s1081_s12, 2  ;;  %s231_s29 = scalar_lea.sflag (!%p952_p8), [#allocation3], %s1081_s12 }
  0x60   : > { %s234_s17 = scalar_lea.vmem (!%p952_p8), [#allocation2], %s572_s13  ;;  %p1167_p4 = scmp.ne.s32.totalorder (!%p952_p8), %s1160_s24, 0 }
  0x65   : > { %847 = dma.done.wait (%p1167_p4), %s231_s29, 64  }
  0x66   : > { %849 = vsyncadd (%p1167_p4), %s231_s29, 4294967232  ;;  %p1168_p5 = scmp.eq.s32.totalorder %s933_s22, 0 }
  0x68   : > { %851 = dma.done.wait (%p1168_p5), [#allocation6], 1280   ;;  %p1169_p8 = pmov %p1168_p5 }
  0x69   : > { %v879_v0 = vmov 0.0   ;;  %vm880_vm0 = vmmov 0   ;;  %v704_v1 = vld [vmem:[#allocation5] sm:$0xff]   ;;  %v705_v2 = vld [vmem:[#allocation5 + $0x8] sm:$0xff]   ;;  %vm294_vm1 = vcmask 261120   ;;  %v706_v4 = vld [vmem:[#allocation7] sm:$0xff]  }
  0x6a   : > { %853 = vsyncadd (%p1169_p8), [#allocation6], 4294966016  ;;  %605 = vmatprep.subr.bf16.mxu0 %v879_v0  ;;  %609 = vmatprep.mubr.msk.bf16.mxu0 %vm880_vm0, %v879_v0  ;;  %v270_v3 = vld [vmem:[%s234_s17] sm:$0xf]  ;;  %v708_v6 = vld [vmem:[#allocation7 + $0x10] sm:$0xff]   ;;  %s590_s11 = sshll.u32 %s933_s22, 6 }
  0x6b   : > { %613 = vmatprep.subr.bf16.mxu1 %v879_v0  ;;  %629 = vmatprep.mubr.msk.bf16.mxu1 %vm880_vm0, %v879_v0  ;;  %v707_v5 = vld [vmem:[#allocation7 + $0x8] sm:$0xff]   ;;  %v709_v7 = vld [vmem:[#allocation7 + $0x18] sm:$0xff]   ;;  %v710_v8 = vld [vmem:[#allocation7 + $0x20] sm:$0xff]   ;;  %s268_s28 = scalar_lea.vmem [#allocation8], %s572_s13  ;;  %s1107_s15 = scalar_lea.hbm %s1156_s5, %s590_s11 }
  0x6c   : > { %606 = vmatpush3.bf16.msra.mxu0 %v704_v1  ;;  %614 = vmatpush3.bf16.msra.mxu1 %v706_v4  ;;  %v711_v9 = vld [vmem:[#allocation7 + $0x28] sm:$0xff]   ;;  %v712_v10 = vld [vmem:[#allocation7 + $0x30] sm:$0xff]   ;;  %v713_v11 = vld [vmem:[#allocation7 + $0x38] sm:$0xff]   ;;  %s475_s7 = sshll.u32 %s268_s28, 4  ;;  %s462_s22 = scalar_lea.sflag [#allocation4], %s1081_s12  ;;  %s1109_s7 = int_to_ptr.vmem [resolvable:$true] %s475_s7 }
  0x6d   : > { %607 = vmatprep.subr.bf16.mxu0 %v879_v0  ;;  %615 = vmatprep.subr.bf16.mxu1 %v879_v0  ;;  %v576_v12 = vld [vmem:[%s1153_s2] ss:$0 sm:$0xff]  ;;  %s802_s16 = scalar_lea.vmem %s1109_s7, 64  ;;  %p1170_p0 = scmp.ne.s32.totalorder %s1165_s23, 0 }
  0x6e   : > { %v580_v28 = vld [vmem:[%s1155_s4] ss:$0 sm:$0xff]  ;;  %p803_p11 = scmp.ne.s32.totalorder %s1109_s7, %s802_s16  ;;  %s881_s9 = smov [#allocation8]  }
  0x6f   : > { %s806_s13 = sshll.u32 %s881_s9, 4  ;;  %s807_s13 = int_to_ptr.vmem [resolvable:$false] %s806_s13 }
  0x70   : > { %608 = vmatpush3.bf16.msra.mxu0 %v705_v2  ;;  %616 = vmatpush3.bf16.msra.mxu1 %v707_v5  ;;  %p804_p1 = pnand %p803_p11, %p1170_p0  ;;  %s808_s29 = scalar_lea.vmem %s807_s13, 128 }
  0x71   : > { %617 = vmatprep.subr.bf16.mxu1 %v879_v0  ;;  %p809_p7 = scmp.lt.s32.totalorder %s1109_s7, %s807_s13  ;;  %p810_p9 = scmp.lt.s32.totalorder %s808_s29, %s802_s16 }
  0x72   : > { %p805_p3 = pneg %p804_p1 }
  0x73   : > { %610 = vmatmul.mubr.msk.bf16.vlgmr.msra.gmra.mrb[0].mxu0 %vm294_vm1, %v270_v3  ;;  %p811_p12 = por %p810_p9, %p809_p7 }
  0x74   : > { %618 = vmatpush3.bf16.msra.mxu1 %v708_v6 }
  0x75   : > { %619 = vmatprep.subr.bf16.mxu1 %v879_v0  ;;  %p812_p2 = pnand %p811_p12, %p805_p3 }
  0x78   : > { %620 = vmatpush3.bf16.msra.mxu1 %v709_v7 }
  0x79   : > { %621 = vmatprep.subr.bf16.mxu1 %v879_v0 }
  0x7c   : > { %622 = vmatpush3.bf16.msra.mxu1 %v710_v8 }
  0x7d   : > { %623 = vmatprep.subr.bf16.mxu1 %v879_v0 }
  0x80   : > { %624 = vmatpush3.bf16.msra.mxu1 %v711_v9 }
  0x81   : > { %625 = vmatprep.subr.bf16.mxu1 %v879_v0 }
  0x84   : > { %626 = vmatpush3.bf16.msra.mxu1 %v712_v10 }
  0x85   : > { %627 = vmatprep.subr.bf16.mxu1 %v879_v0 }
  0x88   : > { %628 = vmatpush3.bf16.msra.mxu1 %v713_v11 }
 0x146   : > { %v332_v13 = vpop.f32.mrb[0].mxu0 }
 0x147   : > { %v333_v14 = vadd.f32 %v576_v12, %v332_v13  ;;  %v611_v15 = vpop.f32.mrb[1].mxu0 }
 0x148   : > { %v335_v16 = vpop.f32.mrb[2].mxu0 }
 0x149   : > { %v338_v17 = vmul.f32 %v333_v14, %v333_v14  ;;  %v612_v18 = vpop.f32.mrb[3].mxu0 }
 0x14b   : > { %v339_v19 = vmul.f32 %v338_v17, %v333_v14 }
 0x14d   : > { %v340_v20 = vmul.f32 0.044715, %v339_v19 }
 0x14f   : > { %v341_v21 = vadd.f32 %v340_v20, %v333_v14 }
 0x151   : > { %v342_v22 = vmul.f32 0.7978846, %v341_v21 }
 0x153   : > { %714 = vtanh.f32 %v342_v22 }
 0x15d   : > { %v715_v23 = vpop.eup %714 }
 0x15e   : > { %v344_v24 = vadd.f32 1.0, %v715_v23 }
 0x160   : > { %v345_v25 = vmul.f32 0.5, %v344_v24 }
 0x162   : > { %v346_v26 = vmul.f32 %v345_v25, %v333_v14 }
 0x164   : > { %v347_v27 = vpack.c.bf16 %v346_v26, %v346_v26 }
 0x166   : > { %630 = vmatmul.mubr.bf16.vlgmr.msra.gmra.mrb[0].mxu1 %v347_v27 }
 0x239   : > { %v453_v29 = vpop.f32.mrb[0].mxu1 }
 0x23a   : > { %v454_v30 = vadd.f32 %v580_v28, %v453_v29  ;;  %v631_v31 = vpop.f32.mrb[1].mxu1 }
 0x23b   : > { %v456_v32 = vpop.f32.mrb[2].mxu1 }
 0x23c   : > { %v459_v33 = vpack.c.bf16 %v454_v30, %v454_v30  ;;  %v632_v34 = vpop.f32.mrb[3].mxu1 }
 0x23e   : > { %460 = vst [vmem:[%s268_s28] sm:$0xf] %v459_v33 }
 0x23f   : > { %815 = shalt.err (!%p812_p2)
}
 0x240   : > { %s816_s12 = scalar_lea.hbm %s1107_s15, 64  ;;  %s820_s26 = scalar_lea.hbm %s1156_s5, 128 }
 0x241   : > { %p817_p13 = scmp.ne.s32.totalorder %s1107_s15, %s816_s12  ;;  %p821_p4 = scmp.lt.u32.totalorder %s1107_s15, %s1156_s5 }
 0x242   : > { %p822_p5 = scmp.lt.u32.totalorder %s820_s26, %s816_s12  ;;  %p824_p11 = scmp.lt.u32.totalorder %s816_s12, %s1107_s15 }
 0x243   : > { %p818_p6 = pnand %p817_p13, %p1170_p0 }
 0x244   : > { %p823_p8 = por %p822_p5, %p821_p4 }
 0x245   : > { %p819_p10 = pneg %p818_p6 }
 0x246   : > { %p825_p1 = por %p824_p11, %p823_p8 }
 0x248   : > { %p826_p3 = pnand %p825_p1, %p819_p10 }
 0x24a   : > { %829 = shalt.err (!%p826_p3)
}
 0x24b   : > { %643 = dma.vmem_to_hbm [thread:$0]  (%p1170_p0), %s1109_s7, 64, %s1107_s15, %s462_s22  }
 0x24c PF: > { %s487_s11 = sand.u32 1, %s860_s18   ;;  %p1171_p7 = scmp.ne.s32.totalorder %s1161_s25, 0 }
 0x24d   : > { %p1172_p9 = scmp.ge.s32.totalorder %s872_s21, 2  ;;  %s488_s28 = scalar_lea.sflag [#allocation4], %s487_s11 }
 0x24f   : > { %p657_p12 = pnand %p1172_p9, %p1171_p7 }
 0x251   : > { %855 = dma.done.wait (!%p657_p12), %s488_s28, 64  }
 0x252   : > { %857 = vsyncadd (!%p657_p12), %s488_s28, 4294967232  ;;  %p19_p2 = scmp.ge.s32.totalorder %s1022_s14, 4   ;;  %s1173_s18 = smov %s864_s19 }
 0x253   : > { %s1174_s19 = smov %s868_s20  ;;  %s1175_s20 = smov %s1038_s27 }
 0x254   : > { %s1176_s21 = smov %s1022_s14  ;;  %21 = sbr.rel (!%p19_p2) target bundleno = 6 (0x6), region = 93 }
 0x25b   :  { %493 = vsyncpa [#allocation3], 1 }
 0x25c   :  { %495 = vsyncpa [#allocation3 + $0x1], 1 }
 0x25d   :  { %496 = vsyncpa [#allocation6], 1 }
 0x25e   :  { %497 = vsyncpa [#allocation4], 1 }
 0x25f   :  { %499 = vsyncpa [#allocation4 + $0x1], 1 }

</bundles_post_ra>
